<compile_context>
chip_gen: v6e
topology: v6e:2x2x1
jax: 0.10.0
libtpu: 0.0.40
codegen_flags: <defaults>
</compile_context>

<pallas_src>
import functools

import jax
import jax.numpy as jnp
from jax.experimental import pallas as pl
from jax.experimental.pallas import tpu as pltpu

NUM_REL = 3
NUM_LAYERS = 4
HIDDEN = 32
NUM_BASES = 2
MLP_HIDDEN = 64


# --------------------------------------------------------------------------
# Fused Pallas kernel: 4x RelGraphConv(+tanh) + AvgPool + MLP head + sigmoid
# (one grid step == one graph)
# --------------------------------------------------------------------------
def _frgcn_kernel(x_ref, adj_ref,
                  wstack0_ref, b0_ref, wstack_ref, b_ref,
                  w1_ref, b1_ref, w2_ref, b2_ref,
                  o_ref,
                  pooled_ref,
                  *, num_rel, num_layers, hidden):
    # x_ref: (N, Din) f32, adj_ref: (R, N, N) bf16 (exact 0/1).
    h_in = x_ref[...].astype(jnp.bfloat16)              # in-kernel cast (no extra XLA pass)

    for l in range(num_layers):                         # static unroll over layers
        if l == 0:
            wstack = wstack0_ref[...]                   # (Din0, (R+1)*H) bf16
            bias = b0_ref[...]                          # (1, H) f32
        else:
            wstack = wstack_ref[l - 1]                  # (H, (R+1)*H) bf16
            bias = b_ref[l - 1]                         # (1, H) f32

        # One lane-dense MXU matmul: [X@W_self | X@W_0 | X@W_1 | X@W_2]
        xw = jnp.dot(h_in, wstack, preferred_element_type=jnp.float32)  # (N, (R+1)*H) f32

        acc = xw[:, :hidden] + bias                     # self-loop + bias (f32)
        xw_rel = xw[:, hidden:].astype(jnp.bfloat16)    # single wide cast per layer
        for r in range(num_rel):                        # static unroll over relations
            acc = acc + jnp.dot(adj_ref[r],
                                xw_rel[:, r * hidden:(r + 1) * hidden],
                                preferred_element_type=jnp.float32)

        h = jnp.tanh(acc)                               # (N, H) f32
        # AvgPool commutes with concat: accumulate the pooled per-layer mean only.
        pooled_ref[:, l * hidden:(l + 1) * hidden] = jnp.mean(h, axis=0, keepdims=True)
        h_in = h.astype(jnp.bfloat16)

    # ----- head: Linear(128,64) -> relu -> (dropout=identity) -> Linear(64,1) -> sigmoid
    pooled = pooled_ref[...]                            # (1, 4H) f32
    z = jnp.dot(pooled, w1_ref[...], preferred_element_type=jnp.float32) + b1_ref[...]
    z = jnp.maximum(z, 0.0)                             # relu
    y = jnp.dot(z, w2_ref[...], preferred_element_type=jnp.float32) + b2_ref[...]
    o_ref[...] = jax.nn.sigmoid(y)                      # (1, 1)


def _vmem_limit_bytes():
    """Per-generation scoped VMEM limit (leave headroom under physical VMEM)."""
    try:
        cap = int(pltpu.get_tpu_info().vmem_capacity_bytes)
        return min(int(cap * 0.85), 100 * 1024 * 1024)  # ~100 MiB v5e/v6e, ~54 MiB v7x
    except Exception:
        return 48 * 1024 * 1024


def frgcn_forward(x, adj, prep):
    """FRGCN forward for a batch of B dense graphs in one pallas_call.

    x:   (B, N, Din) float32 node features.
    adj: (B, R, N, N) bfloat16 per-relation 0/1 adjacency (store as bf16!).
    Returns (B,) float32 per-graph scores.
    """
    B, N, din = x.shape
    R = adj.shape[1]
    assert adj.shape == (B, R, N, N)
    if adj.dtype != jnp.bfloat16:
        # Callers should store the adjacency as bf16 to avoid this extra HBM pass.
        adj = adj.astype(jnp.bfloat16)

    wstack0 = prep["wstack0"]                           # (din, (R+1)*H) bf16
    wstack_rest = prep["wstack_rest"]                   # (L-1, H, (R+1)*H) bf16
    b0 = prep["b0"]                                     # (1, H) f32
    b_rest = prep["b_rest"]                             # (L-1, 1, H) f32
    w1, b1, w2, b2 = prep["w1"], prep["b1"], prep["w2"], prep["b2"]

    wide = (R + 1) * HIDDEN
    fcat = NUM_LAYERS * HIDDEN

    out = pl.pallas_call(
        functools.partial(_frgcn_kernel, num_rel=R, num_layers=NUM_LAYERS,
                          hidden=HIDDEN),
        out_shape=jax.ShapeDtypeStruct((B, 1, 1), jnp.float32),
        grid=(B,),
        in_specs=[
            # per-graph blocks (leading batch dim squeezed out in the kernel)
            pl.BlockSpec((None, N, din), lambda b: (b, 0, 0)),                  # x
            pl.BlockSpec((None, R, N, N), lambda b: (b, 0, 0, 0)),              # adj
            # weights: constant index maps -> stay VMEM-resident across graphs
            pl.BlockSpec((din, wide), lambda b: (0, 0)),                        # wstack0
            pl.BlockSpec((1, HIDDEN), lambda b: (0, 0)),                        # b0
            pl.BlockSpec((NUM_LAYERS - 1, HIDDEN, wide), lambda b: (0, 0, 0)),  # wstack 1..3
            pl.BlockSpec((NUM_LAYERS - 1, 1, HIDDEN), lambda b: (0, 0, 0)),     # b 1..3
            pl.BlockSpec((fcat, MLP_HIDDEN), lambda b: (0, 0)),                 # w1
            pl.BlockSpec((1, MLP_HIDDEN), lambda b: (0, 0)),                    # b1
            pl.BlockSpec((MLP_HIDDEN, 1), lambda b: (0, 0)),                    # w2
            pl.BlockSpec((1, 1), lambda b: (0, 0)),                             # b2
        ],
        out_specs=pl.BlockSpec((None, 1, 1), lambda b: (b, 0, 0)),
        scratch_shapes=[pltpu.VMEM((1, fcat), jnp.float32)],                    # pooled accum
        compiler_params=pltpu.CompilerParams(
            dimension_semantics=("parallel",),           # split graphs across v7x's 2 TCs
            vmem_limit_bytes=_vmem_limit_bytes()),
    )(x, adj, wstack0, b0, wstack_rest, b_rest, w1, b1, w2, b2)
    return out[:, 0, 0]


# --------------------------------------------------------------------------
# Parameter setup (deterministic) and one-time prep (basis fold + packing)
# --------------------------------------------------------------------------
def init_params(key, input_dims):
    params = {"layers": []}
    dims = [input_dims] + [HIDDEN] * NUM_LAYERS
    for l in range(NUM_LAYERS):
        key, k1, k2, k3, k4 = jax.random.split(key, 5)
        din, dout = dims[l], dims[l + 1]
        scale = 1.0 / jnp.sqrt(jnp.float32(din))
        params["layers"].append({
            "bases": jax.random.normal(k1, (NUM_BASES, din, dout), jnp.float32) * scale,
            "w_comp": jax.random.normal(k2, (NUM_REL, NUM_BASES), jnp.float32),
            "w_self": jax.random.normal(k3, (din, dout), jnp.float32) * scale,
            "bias": jax.random.normal(k4, (1, dout), jnp.float32) * 0.01,
        })
    key, k1, k2, k3, k4 = jax.random.split(key, 5)
    params["w1"] = jax.random.normal(k1, (NUM_LAYERS * HIDDEN, MLP_HIDDEN),
                                     jnp.float32) / jnp.sqrt(128.0)
    params["b1"] = jax.random.normal(k2, (1, MLP_HIDDEN), jnp.float32) * 0.01
    params["w2"] = jax.random.normal(k3, (MLP_HIDDEN, 1), jnp.float32) / jnp.sqrt(64.0)
    params["b2"] = jax.random.normal(k4, (1, 1), jnp.float32) * 0.01
    return params


def prepare_params(params):
    """Fold basis decomposition + pack [W_self | W_r...] into lane-dense weights."""
    stacks, biases = [], []
    for lp in params["layers"]:
        # W_r = sum_b w_comp[r, b] * bases[b]  -> (R, Din, H)
        w_rel = jnp.einsum("rb,bio->rio", lp["w_comp"], lp["bases"])
        wstack = jnp.concatenate(
            [lp["w_self"]] + [w_rel[r] for r in range(NUM_REL)], axis=1)  # (Din, (R+1)*H)
        stacks.append(wstack.astype(jnp.bfloat16))
        biases.append(lp["bias"])
    return {
        "wstack0": stacks[0],
        "b0": biases[0],
        "wstack_rest": jnp.stack(stacks[1:], axis=0),
        "b_rest": jnp.stack(biases[1:], axis=0),
        "w1": params["w1"], "b1": params["b1"],
        "w2": params["w2"], "b2": params["b2"],
    }


if __name__ == "__main__":
    key = jax.random.PRNGKey(0)
    k_x, k_adj, k_p = jax.random.split(key, 3)

    B, N, DIN = 2, 16, 16                               # small synthetic graph batch
    x = jax.random.normal(k_x, (B, N, DIN), jnp.float32)
    # deterministic sparse per-relation adjacency (~15% density), stored as bf16
    # (exact 0/1 => lossless) so no wrapper-side cast / extra HBM pass is needed.
    adj = (jax.random.uniform(k_adj, (B, NUM_REL, N, N)) < 0.15).astype(jnp.bfloat16)

    params = init_params(k_p, DIN)
    prep = prepare_params(params)                       # one-time (constant at inference)

    out = frgcn_forward(x, adj, prep)
    jax.block_until_ready(out)
    assert out.shape == (B,) and out.dtype == jnp.float32
    print("KERNEL_OK")
</pallas_src>

<mosaic_0001>
module attributes {stable_mosaic.version = 11 : i64} {
  func.func @_frgcn_kernel(%arg0: i32, %arg1: memref<1x16x16xf32, #tpu.memory_space<vmem>>, %arg2: memref<1x3x16x16xbf16, #tpu.memory_space<vmem>>, %arg3: memref<16x128xbf16, #tpu.memory_space<vmem>>, %arg4: memref<1x32xf32, #tpu.memory_space<vmem>>, %arg5: memref<3x32x128xbf16, #tpu.memory_space<vmem>>, %arg6: memref<3x1x32xf32, #tpu.memory_space<vmem>>, %arg7: memref<128x64xf32, #tpu.memory_space<vmem>>, %arg8: memref<1x64xf32, #tpu.memory_space<vmem>>, %arg9: memref<64x1xf32, #tpu.memory_space<vmem>>, %arg10: memref<1x1xf32, #tpu.memory_space<vmem>>, %arg11: memref<1x1x1xf32, #tpu.memory_space<vmem>>, %arg12: memref<1x128xf32, #tpu.memory_space<vmem>>) attributes {dimension_semantics = [#tpu.dimension_semantics<parallel>], iteration_bounds = array<i64: 2>, scalar_prefetch = 0 : i64, scratch_operands = 1 : i64, tpu.core_type = #tpu.core_type<tc>, window_params = [{transform_indices = @transform_0, window_bounds = array<i64: 1, 16, 16>}, {transform_indices = @transform_1, window_bounds = array<i64: 1, 3, 16, 16>}, {pipeline_mode = #tpu.pipeline_mode<synchronous>, transform_indices = @transform_2, window_bounds = array<i64: 16, 128>}, {pipeline_mode = #tpu.pipeline_mode<synchronous>, transform_indices = @transform_3, window_bounds = array<i64: 1, 32>}, {pipeline_mode = #tpu.pipeline_mode<synchronous>, transform_indices = @transform_4, window_bounds = array<i64: 3, 32, 128>}, {pipeline_mode = #tpu.pipeline_mode<synchronous>, transform_indices = @transform_5, window_bounds = array<i64: 3, 1, 32>}, {pipeline_mode = #tpu.pipeline_mode<synchronous>, transform_indices = @transform_6, window_bounds = array<i64: 128, 64>}, {pipeline_mode = #tpu.pipeline_mode<synchronous>, transform_indices = @transform_7, window_bounds = array<i64: 1, 64>}, {pipeline_mode = #tpu.pipeline_mode<synchronous>, transform_indices = @transform_8, window_bounds = array<i64: 64, 1>}, {pipeline_mode = #tpu.pipeline_mode<synchronous>, transform_indices = @transform_9, window_bounds = array<i64: 1, 1>}, {transform_indices = @transform_10, window_bounds = array<i64: 1, 1, 1>}]} {
    %c0 = arith.constant 0 : index
    %c0_0 = arith.constant 0 : index
    %c0_1 = arith.constant 0 : index
    %0 = vector.load %arg1[%c0, %c0_0, %c0_1] : memref<1x16x16xf32, #tpu.memory_space<vmem>>, vector<1x16x16xf32>
    %1 = vector.shape_cast %0 : vector<1x16x16xf32> to vector<16x16xf32>
    %2 = arith.truncf %1 : vector<16x16xf32> to vector<16x16xbf16>
    %c0_2 = arith.constant 0 : index
    %c0_3 = arith.constant 0 : index
    %3 = vector.load %arg3[%c0_2, %c0_3] : memref<16x128xbf16, #tpu.memory_space<vmem>>, vector<16x128xbf16>
    %c0_4 = arith.constant 0 : index
    %c0_5 = arith.constant 0 : index
    %4 = vector.load %arg4[%c0_4, %c0_5] : memref<1x32xf32, #tpu.memory_space<vmem>>, vector<1x32xf32>
    %cst = arith.constant dense<0.000000e+00> : vector<16x128xf32>
    %5 = tpu.matmul %2, %3, %cst {dimension_numbers = #tpu.dot_dimension_numbers<[1], [0], [0], [1], [0, 0, 1, 1], [], []>} : vector<16x16xbf16>, vector<16x128xbf16>, vector<16x128xf32> -> vector<16x128xf32>
    %6 = vector.extract_strided_slice %5 {offsets = [0, 0], sizes = [16, 32], strides = [1, 1]} : vector<16x128xf32> to vector<16x32xf32>
    %7 = vector.broadcast %4 : vector<1x32xf32> to vector<16x32xf32>
    %8 = arith.addf %6, %7 : vector<16x32xf32>
    %9 = vector.extract_strided_slice %5 {offsets = [0, 32], sizes = [16, 96], strides = [1, 1]} : vector<16x128xf32> to vector<16x96xf32>
    %10 = arith.truncf %9 : vector<16x96xf32> to vector<16x96xbf16>
    %c0_6 = arith.constant 0 : index
    %c0_7 = arith.constant 0 : index
    %c0_8 = arith.constant 0 : index
    %c0_9 = arith.constant 0 : index
    %11 = vector.load %arg2[%c0_6, %c0_7, %c0_8, %c0_9] : memref<1x3x16x16xbf16, #tpu.memory_space<vmem>>, vector<1x1x16x16xbf16>
    %12 = vector.shape_cast %11 : vector<1x1x16x16xbf16> to vector<16x16xbf16>
    %13 = vector.extract_strided_slice %10 {offsets = [0, 0], sizes = [16, 32], strides = [1, 1]} : vector<16x96xbf16> to vector<16x32xbf16>
    %cst_10 = arith.constant dense<0.000000e+00> : vector<16x32xf32>
    %14 = tpu.matmul %12, %13, %cst_10 {dimension_numbers = #tpu.dot_dimension_numbers<[1], [0], [0], [1], [0, 0, 1, 1], [], []>} : vector<16x16xbf16>, vector<16x32xbf16>, vector<16x32xf32> -> vector<16x32xf32>
    %15 = arith.addf %8, %14 : vector<16x32xf32>
    %c0_11 = arith.constant 0 : index
    %c1 = arith.constant 1 : index
    %c0_12 = arith.constant 0 : index
    %c0_13 = arith.constant 0 : index
    %16 = vector.load %arg2[%c0_11, %c1, %c0_12, %c0_13] : memref<1x3x16x16xbf16, #tpu.memory_space<vmem>>, vector<1x1x16x16xbf16>
    %17 = vector.shape_cast %16 : vector<1x1x16x16xbf16> to vector<16x16xbf16>
    %18 = vector.extract_strided_slice %10 {offsets = [0, 32], sizes = [16, 32], strides = [1, 1]} : vector<16x96xbf16> to vector<16x32xbf16>
    %cst_14 = arith.constant dense<0.000000e+00> : vector<16x32xf32>
    %19 = tpu.matmul %17, %18, %cst_14 {dimension_numbers = #tpu.dot_dimension_numbers<[1], [0], [0], [1], [0, 0, 1, 1], [], []>} : vector<16x16xbf16>, vector<16x32xbf16>, vector<16x32xf32> -> vector<16x32xf32>
    %20 = arith.addf %15, %19 : vector<16x32xf32>
    %c0_15 = arith.constant 0 : index
    %c2 = arith.constant 2 : index
    %c0_16 = arith.constant 0 : index
    %c0_17 = arith.constant 0 : index
    %21 = vector.load %arg2[%c0_15, %c2, %c0_16, %c0_17] : memref<1x3x16x16xbf16, #tpu.memory_space<vmem>>, vector<1x1x16x16xbf16>
    %22 = vector.shape_cast %21 : vector<1x1x16x16xbf16> to vector<16x16xbf16>
    %23 = vector.extract_strided_slice %10 {offsets = [0, 64], sizes = [16, 32], strides = [1, 1]} : vector<16x96xbf16> to vector<16x32xbf16>
    %cst_18 = arith.constant dense<0.000000e+00> : vector<16x32xf32>
    %24 = tpu.matmul %22, %23, %cst_18 {dimension_numbers = #tpu.dot_dimension_numbers<[1], [0], [0], [1], [0, 0, 1, 1], [], []>} : vector<16x16xbf16>, vector<16x32xbf16>, vector<16x32xf32> -> vector<16x32xf32>
    %25 = arith.addf %20, %24 : vector<16x32xf32>
    %26 = math.tanh %25 : vector<16x32xf32>
    %cst_19 = arith.constant dense<0.000000e+00> : vector<32xf32>
    %27 = vector.multi_reduction <add>, %26, %cst_19 [0] : vector<16x32xf32> to vector<32xf32>
    %28 = vector.shape_cast %27 : vector<32xf32> to vector<1x32xf32>
    %cst_20 = arith.constant 1.600000e+01 : f32
    %29 = vector.broadcast %cst_20 : f32 to vector<1x32xf32>
    %30 = arith.divf %28, %29 : vector<1x32xf32>
    %c0_21 = arith.constant 0 : index
    %c0_22 = arith.constant 0 : index
    %31 = vector.load %arg12[%c0_21, %c0_22] : memref<1x128xf32, #tpu.memory_space<vmem>>, vector<1x32xf32>
    tpu.vector_store %arg12[%c0_21, %c0_22], %30 {strides = array<i32>} : memref<1x128xf32, #tpu.memory_space<vmem>>, vector<1x32xf32>,
    %32 = arith.truncf %26 : vector<16x32xf32> to vector<16x32xbf16>
    %c0_23 = arith.constant 0 : index
    %c0_24 = arith.constant 0 : index
    %c0_25 = arith.constant 0 : index
    %33 = vector.load %arg5[%c0_23, %c0_24, %c0_25] : memref<3x32x128xbf16, #tpu.memory_space<vmem>>, vector<1x32x128xbf16>
    %34 = vector.shape_cast %33 : vector<1x32x128xbf16> to vector<32x128xbf16>
    %c0_26 = arith.constant 0 : index
    %c0_27 = arith.constant 0 : index
    %c0_28 = arith.constant 0 : index
    %35 = vector.load %arg6[%c0_26, %c0_27, %c0_28] : memref<3x1x32xf32, #tpu.memory_space<vmem>>, vector<1x1x32xf32>
    %36 = vector.shape_cast %35 : vector<1x1x32xf32> to vector<1x32xf32>
    %cst_29 = arith.constant dense<0.000000e+00> : vector<16x128xf32>
    %37 = tpu.matmul %32, %34, %cst_29 {dimension_numbers = #tpu.dot_dimension_numbers<[1], [0], [0], [1], [0, 0, 1, 1], [], []>} : vector<16x32xbf16>, vector<32x128xbf16>, vector<16x128xf32> -> vector<16x128xf32>
    %38 = vector.extract_strided_slice %37 {offsets = [0, 0], sizes = [16, 32], strides = [1, 1]} : vector<16x128xf32> to vector<16x32xf32>
    %39 = vector.broadcast %36 : vector<1x32xf32> to vector<16x32xf32>
    %40 = arith.addf %38, %39 : vector<16x32xf32>
    %41 = vector.extract_strided_slice %37 {offsets = [0, 32], sizes = [16, 96], strides = [1, 1]} : vector<16x128xf32> to vector<16x96xf32>
    %42 = arith.truncf %41 : vector<16x96xf32> to vector<16x96xbf16>
    %c0_30 = arith.constant 0 : index
    %c0_31 = arith.constant 0 : index
    %c0_32 = arith.constant 0 : index
    %c0_33 = arith.constant 0 : index
    %43 = vector.load %arg2[%c0_30, %c0_31, %c0_32, %c0_33] : memref<1x3x16x16xbf16, #tpu.memory_space<vmem>>, vector<1x1x16x16xbf16>
    %44 = vector.shape_cast %43 : vector<1x1x16x16xbf16> to vector<16x16xbf16>
    %45 = vector.extract_strided_slice %42 {offsets = [0, 0], sizes = [16, 32], strides = [1, 1]} : vector<16x96xbf16> to vector<16x32xbf16>
    %cst_34 = arith.constant dense<0.000000e+00> : vector<16x32xf32>
    %46 = tpu.matmul %44, %45, %cst_34 {dimension_numbers = #tpu.dot_dimension_numbers<[1], [0], [0], [1], [0, 0, 1, 1], [], []>} : vector<16x16xbf16>, vector<16x32xbf16>, vector<16x32xf32> -> vector<16x32xf32>
    %47 = arith.addf %40, %46 : vector<16x32xf32>
    %c0_35 = arith.constant 0 : index
    %c1_36 = arith.constant 1 : index
    %c0_37 = arith.constant 0 : index
    %c0_38 = arith.constant 0 : index
    %48 = vector.load %arg2[%c0_35, %c1_36, %c0_37, %c0_38] : memref<1x3x16x16xbf16, #tpu.memory_space<vmem>>, vector<1x1x16x16xbf16>
    %49 = vector.shape_cast %48 : vector<1x1x16x16xbf16> to vector<16x16xbf16>
    %50 = vector.extract_strided_slice %42 {offsets = [0, 32], sizes = [16, 32], strides = [1, 1]} : vector<16x96xbf16> to vector<16x32xbf16>
    %cst_39 = arith.constant dense<0.000000e+00> : vector<16x32xf32>
    %51 = tpu.matmul %49, %50, %cst_39 {dimension_numbers = #tpu.dot_dimension_numbers<[1], [0], [0], [1], [0, 0, 1, 1], [], []>} : vector<16x16xbf16>, vector<16x32xbf16>, vector<16x32xf32> -> vector<16x32xf32>
    %52 = arith.addf %47, %51 : vector<16x32xf32>
    %c0_40 = arith.constant 0 : index
    %c2_41 = arith.constant 2 : index
    %c0_42 = arith.constant 0 : index
    %c0_43 = arith.constant 0 : index
    %53 = vector.load %arg2[%c0_40, %c2_41, %c0_42, %c0_43] : memref<1x3x16x16xbf16, #tpu.memory_space<vmem>>, vector<1x1x16x16xbf16>
    %54 = vector.shape_cast %53 : vector<1x1x16x16xbf16> to vector<16x16xbf16>
    %55 = vector.extract_strided_slice %42 {offsets = [0, 64], sizes = [16, 32], strides = [1, 1]} : vector<16x96xbf16> to vector<16x32xbf16>
    %cst_44 = arith.constant dense<0.000000e+00> : vector<16x32xf32>
    %56 = tpu.matmul %54, %55, %cst_44 {dimension_numbers = #tpu.dot_dimension_numbers<[1], [0], [0], [1], [0, 0, 1, 1], [], []>} : vector<16x16xbf16>, vector<16x32xbf16>, vector<16x32xf32> -> vector<16x32xf32>
    %57 = arith.addf %52, %56 : vector<16x32xf32>
    %58 = math.tanh %57 : vector<16x32xf32>
    %cst_45 = arith.constant dense<0.000000e+00> : vector<32xf32>
    %59 = vector.multi_reduction <add>, %58, %cst_45 [0] : vector<16x32xf32> to vector<32xf32>
    %60 = vector.shape_cast %59 : vector<32xf32> to vector<1x32xf32>
    %cst_46 = arith.constant 1.600000e+01 : f32
    %61 = vector.broadcast %cst_46 : f32 to vector<1x32xf32>
    %62 = arith.divf %60, %61 : vector<1x32xf32>
    %c0_47 = arith.constant 0 : index
    %c32 = arith.constant 32 : index
    %63 = vector.load %arg12[%c0_47, %c32] : memref<1x128xf32, #tpu.memory_space<vmem>>, vector<1x32xf32>
    tpu.vector_store %arg12[%c0_47, %c32], %62 {strides = array<i32>} : memref<1x128xf32, #tpu.memory_space<vmem>>, vector<1x32xf32>,
    %64 = arith.truncf %58 : vector<16x32xf32> to vector<16x32xbf16>
    %c1_48 = arith.constant 1 : index
    %c0_49 = arith.constant 0 : index
    %c0_50 = arith.constant 0 : index
    %65 = vector.load %arg5[%c1_48, %c0_49, %c0_50] : memref<3x32x128xbf16, #tpu.memory_space<vmem>>, vector<1x32x128xbf16>
    %66 = vector.shape_cast %65 : vector<1x32x128xbf16> to vector<32x128xbf16>
    %c1_51 = arith.constant 1 : index
    %c0_52 = arith.constant 0 : index
    %c0_53 = arith.constant 0 : index
    %67 = vector.load %arg6[%c1_51, %c0_52, %c0_53] : memref<3x1x32xf32, #tpu.memory_space<vmem>>, vector<1x1x32xf32>
    %68 = vector.shape_cast %67 : vector<1x1x32xf32> to vector<1x32xf32>
    %cst_54 = arith.constant dense<0.000000e+00> : vector<16x128xf32>
    %69 = tpu.matmul %64, %66, %cst_54 {dimension_numbers = #tpu.dot_dimension_numbers<[1], [0], [0], [1], [0, 0, 1, 1], [], []>} : vector<16x32xbf16>, vector<32x128xbf16>, vector<16x128xf32> -> vector<16x128xf32>
    %70 = vector.extract_strided_slice %69 {offsets = [0, 0], sizes = [16, 32], strides = [1, 1]} : vector<16x128xf32> to vector<16x32xf32>
    %71 = vector.broadcast %68 : vector<1x32xf32> to vector<16x32xf32>
    %72 = arith.addf %70, %71 : vector<16x32xf32>
    %73 = vector.extract_strided_slice %69 {offsets = [0, 32], sizes = [16, 96], strides = [1, 1]} : vector<16x128xf32> to vector<16x96xf32>
    %74 = arith.truncf %73 : vector<16x96xf32> to vector<16x96xbf16>
    %c0_55 = arith.constant 0 : index
    %c0_56 = arith.constant 0 : index
    %c0_57 = arith.constant 0 : index
    %c0_58 = arith.constant 0 : index
    %75 = vector.load %arg2[%c0_55, %c0_56, %c0_57, %c0_58] : memref<1x3x16x16xbf16, #tpu.memory_space<vmem>>, vector<1x1x16x16xbf16>
    %76 = vector.shape_cast %75 : vector<1x1x16x16xbf16> to vector<16x16xbf16>
    %77 = vector.extract_strided_slice %74 {offsets = [0, 0], sizes = [16, 32], strides = [1, 1]} : vector<16x96xbf16> to vector<16x32xbf16>
    %cst_59 = arith.constant dense<0.000000e+00> : vector<16x32xf32>
    %78 = tpu.matmul %76, %77, %cst_59 {dimension_numbers = #tpu.dot_dimension_numbers<[1], [0], [0], [1], [0, 0, 1, 1], [], []>} : vector<16x16xbf16>, vector<16x32xbf16>, vector<16x32xf32> -> vector<16x32xf32>
    %79 = arith.addf %72, %78 : vector<16x32xf32>
    %c0_60 = arith.constant 0 : index
    %c1_61 = arith.constant 1 : index
    %c0_62 = arith.constant 0 : index
    %c0_63 = arith.constant 0 : index
    %80 = vector.load %arg2[%c0_60, %c1_61, %c0_62, %c0_63] : memref<1x3x16x16xbf16, #tpu.memory_space<vmem>>, vector<1x1x16x16xbf16>
    %81 = vector.shape_cast %80 : vector<1x1x16x16xbf16> to vector<16x16xbf16>
    %82 = vector.extract_strided_slice %74 {offsets = [0, 32], sizes = [16, 32], strides = [1, 1]} : vector<16x96xbf16> to vector<16x32xbf16>
    %cst_64 = arith.constant dense<0.000000e+00> : vector<16x32xf32>
    %83 = tpu.matmul %81, %82, %cst_64 {dimension_numbers = #tpu.dot_dimension_numbers<[1], [0], [0], [1], [0, 0, 1, 1], [], []>} : vector<16x16xbf16>, vector<16x32xbf16>, vector<16x32xf32> -> vector<16x32xf32>
    %84 = arith.addf %79, %83 : vector<16x32xf32>
    %c0_65 = arith.constant 0 : index
    %c2_66 = arith.constant 2 : index
    %c0_67 = arith.constant 0 : index
    %c0_68 = arith.constant 0 : index
    %85 = vector.load %arg2[%c0_65, %c2_66, %c0_67, %c0_68] : memref<1x3x16x16xbf16, #tpu.memory_space<vmem>>, vector<1x1x16x16xbf16>
    %86 = vector.shape_cast %85 : vector<1x1x16x16xbf16> to vector<16x16xbf16>
    %87 = vector.extract_strided_slice %74 {offsets = [0, 64], sizes = [16, 32], strides = [1, 1]} : vector<16x96xbf16> to vector<16x32xbf16>
    %cst_69 = arith.constant dense<0.000000e+00> : vector<16x32xf32>
    %88 = tpu.matmul %86, %87, %cst_69 {dimension_numbers = #tpu.dot_dimension_numbers<[1], [0], [0], [1], [0, 0, 1, 1], [], []>} : vector<16x16xbf16>, vector<16x32xbf16>, vector<16x32xf32> -> vector<16x32xf32>
    %89 = arith.addf %84, %88 : vector<16x32xf32>
    %90 = math.tanh %89 : vector<16x32xf32>
    %cst_70 = arith.constant dense<0.000000e+00> : vector<32xf32>
    %91 = vector.multi_reduction <add>, %90, %cst_70 [0] : vector<16x32xf32> to vector<32xf32>
    %92 = vector.shape_cast %91 : vector<32xf32> to vector<1x32xf32>
    %cst_71 = arith.constant 1.600000e+01 : f32
    %93 = vector.broadcast %cst_71 : f32 to vector<1x32xf32>
    %94 = arith.divf %92, %93 : vector<1x32xf32>
    %c0_72 = arith.constant 0 : index
    %c64 = arith.constant 64 : index
    %95 = vector.load %arg12[%c0_72, %c64] : memref<1x128xf32, #tpu.memory_space<vmem>>, vector<1x32xf32>
    tpu.vector_store %arg12[%c0_72, %c64], %94 {strides = array<i32>} : memref<1x128xf32, #tpu.memory_space<vmem>>, vector<1x32xf32>,
    %96 = arith.truncf %90 : vector<16x32xf32> to vector<16x32xbf16>
    %c2_73 = arith.constant 2 : index
    %c0_74 = arith.constant 0 : index
    %c0_75 = arith.constant 0 : index
    %97 = vector.load %arg5[%c2_73, %c0_74, %c0_75] : memref<3x32x128xbf16, #tpu.memory_space<vmem>>, vector<1x32x128xbf16>
    %98 = vector.shape_cast %97 : vector<1x32x128xbf16> to vector<32x128xbf16>
    %c2_76 = arith.constant 2 : index
    %c0_77 = arith.constant 0 : index
    %c0_78 = arith.constant 0 : index
    %99 = vector.load %arg6[%c2_76, %c0_77, %c0_78] : memref<3x1x32xf32, #tpu.memory_space<vmem>>, vector<1x1x32xf32>
    %100 = vector.shape_cast %99 : vector<1x1x32xf32> to vector<1x32xf32>
    %cst_79 = arith.constant dense<0.000000e+00> : vector<16x128xf32>
    %101 = tpu.matmul %96, %98, %cst_79 {dimension_numbers = #tpu.dot_dimension_numbers<[1], [0], [0], [1], [0, 0, 1, 1], [], []>} : vector<16x32xbf16>, vector<32x128xbf16>, vector<16x128xf32> -> vector<16x128xf32>
    %102 = vector.extract_strided_slice %101 {offsets = [0, 0], sizes = [16, 32], strides = [1, 1]} : vector<16x128xf32> to vector<16x32xf32>
    %103 = vector.broadcast %100 : vector<1x32xf32> to vector<16x32xf32>
    %104 = arith.addf %102, %103 : vector<16x32xf32>
    %105 = vector.extract_strided_slice %101 {offsets = [0, 32], sizes = [16, 96], strides = [1, 1]} : vector<16x128xf32> to vector<16x96xf32>
    %106 = arith.truncf %105 : vector<16x96xf32> to vector<16x96xbf16>
    %c0_80 = arith.constant 0 : index
    %c0_81 = arith.constant 0 : index
    %c0_82 = arith.constant 0 : index
    %c0_83 = arith.constant 0 : index
    %107 = vector.load %arg2[%c0_80, %c0_81, %c0_82, %c0_83] : memref<1x3x16x16xbf16, #tpu.memory_space<vmem>>, vector<1x1x16x16xbf16>
    %108 = vector.shape_cast %107 : vector<1x1x16x16xbf16> to vector<16x16xbf16>
    %109 = vector.extract_strided_slice %106 {offsets = [0, 0], sizes = [16, 32], strides = [1, 1]} : vector<16x96xbf16> to vector<16x32xbf16>
    %cst_84 = arith.constant dense<0.000000e+00> : vector<16x32xf32>
    %110 = tpu.matmul %108, %109, %cst_84 {dimension_numbers = #tpu.dot_dimension_numbers<[1], [0], [0], [1], [0, 0, 1, 1], [], []>} : vector<16x16xbf16>, vector<16x32xbf16>, vector<16x32xf32> -> vector<16x32xf32>
    %111 = arith.addf %104, %110 : vector<16x32xf32>
    %c0_85 = arith.constant 0 : index
    %c1_86 = arith.constant 1 : index
    %c0_87 = arith.constant 0 : index
    %c0_88 = arith.constant 0 : index
    %112 = vector.load %arg2[%c0_85, %c1_86, %c0_87, %c0_88] : memref<1x3x16x16xbf16, #tpu.memory_space<vmem>>, vector<1x1x16x16xbf16>
    %113 = vector.shape_cast %112 : vector<1x1x16x16xbf16> to vector<16x16xbf16>
    %114 = vector.extract_strided_slice %106 {offsets = [0, 32], sizes = [16, 32], strides = [1, 1]} : vector<16x96xbf16> to vector<16x32xbf16>
    %cst_89 = arith.constant dense<0.000000e+00> : vector<16x32xf32>
    %115 = tpu.matmul %113, %114, %cst_89 {dimension_numbers = #tpu.dot_dimension_numbers<[1], [0], [0], [1], [0, 0, 1, 1], [], []>} : vector<16x16xbf16>, vector<16x32xbf16>, vector<16x32xf32> -> vector<16x32xf32>
    %116 = arith.addf %111, %115 : vector<16x32xf32>
    %c0_90 = arith.constant 0 : index
    %c2_91 = arith.constant 2 : index
    %c0_92 = arith.constant 0 : index
    %c0_93 = arith.constant 0 : index
    %117 = vector.load %arg2[%c0_90, %c2_91, %c0_92, %c0_93] : memref<1x3x16x16xbf16, #tpu.memory_space<vmem>>, vector<1x1x16x16xbf16>
    %118 = vector.shape_cast %117 : vector<1x1x16x16xbf16> to vector<16x16xbf16>
    %119 = vector.extract_strided_slice %106 {offsets = [0, 64], sizes = [16, 32], strides = [1, 1]} : vector<16x96xbf16> to vector<16x32xbf16>
    %cst_94 = arith.constant dense<0.000000e+00> : vector<16x32xf32>
    %120 = tpu.matmul %118, %119, %cst_94 {dimension_numbers = #tpu.dot_dimension_numbers<[1], [0], [0], [1], [0, 0, 1, 1], [], []>} : vector<16x16xbf16>, vector<16x32xbf16>, vector<16x32xf32> -> vector<16x32xf32>
    %121 = arith.addf %116, %120 : vector<16x32xf32>
    %122 = math.tanh %121 : vector<16x32xf32>
    %cst_95 = arith.constant dense<0.000000e+00> : vector<32xf32>
    %123 = vector.multi_reduction <add>, %122, %cst_95 [0] : vector<16x32xf32> to vector<32xf32>
    %124 = vector.shape_cast %123 : vector<32xf32> to vector<1x32xf32>
    %cst_96 = arith.constant 1.600000e+01 : f32
    %125 = vector.broadcast %cst_96 : f32 to vector<1x32xf32>
    %126 = arith.divf %124, %125 : vector<1x32xf32>
    %c0_97 = arith.constant 0 : index
    %c96 = arith.constant 96 : index
    %127 = vector.load %arg12[%c0_97, %c96] : memref<1x128xf32, #tpu.memory_space<vmem>>, vector<1x32xf32>
    tpu.vector_store %arg12[%c0_97, %c96], %126 {strides = array<i32>} : memref<1x128xf32, #tpu.memory_space<vmem>>, vector<1x32xf32>,
    %c0_98 = arith.constant 0 : index
    %c0_99 = arith.constant 0 : index
    %128 = vector.load %arg12[%c0_98, %c0_99] : memref<1x128xf32, #tpu.memory_space<vmem>>, vector<1x128xf32>
    %c0_100 = arith.constant 0 : index
    %c0_101 = arith.constant 0 : index
    %129 = vector.load %arg7[%c0_100, %c0_101] : memref<128x64xf32, #tpu.memory_space<vmem>>, vector<128x64xf32>
    %cst_102 = arith.constant dense<0.000000e+00> : vector<1x64xf32>
    %130 = tpu.matmul %128, %129, %cst_102 {dimension_numbers = #tpu.dot_dimension_numbers<[1], [0], [0], [1], [0, 0, 1, 1], [], []>} : vector<1x128xf32>, vector<128x64xf32>, vector<1x64xf32> -> vector<1x64xf32>
    %c0_103 = arith.constant 0 : index
    %c0_104 = arith.constant 0 : index
    %131 = vector.load %arg8[%c0_103, %c0_104] : memref<1x64xf32, #tpu.memory_space<vmem>>, vector<1x64xf32>
    %132 = arith.addf %130, %131 : vector<1x64xf32>
    %cst_105 = arith.constant 0.000000e+00 : f32
    %133 = vector.broadcast %cst_105 : f32 to vector<1x64xf32>
    %134 = arith.maximumf %132, %133 : vector<1x64xf32>
    %c0_106 = arith.constant 0 : index
    %c0_107 = arith.constant 0 : index
    %135 = vector.load %arg9[%c0_106, %c0_107] : memref<64x1xf32, #tpu.memory_space<vmem>>, vector<64x1xf32>
    %cst_108 = arith.constant dense<0.000000e+00> : vector<1x1xf32>
    %136 = tpu.matmul %134, %135, %cst_108 {dimension_numbers = #tpu.dot_dimension_numbers<[1], [0], [0], [1], [0, 0, 1, 1], [], []>} : vector<1x64xf32>, vector<64x1xf32>, vector<1x1xf32> -> vector<1x1xf32>
    %c0_109 = arith.constant 0 : index
    %c0_110 = arith.constant 0 : index
    %137 = vector.load %arg10[%c0_109, %c0_110] : memref<1x1xf32, #tpu.memory_space<vmem>>, vector<1x1xf32>
    %138 = arith.addf %136, %137 : vector<1x1xf32>
    %139 = arith.negf %138 : vector<1x1xf32>
    %140 = math.exp %139 : vector<1x1xf32>
    %cst_111 = arith.constant 1.000000e+00 : f32
    %141 = vector.broadcast %cst_111 : f32 to vector<1x1xf32>
    %142 = arith.addf %141, %140 : vector<1x1xf32>
    %143 = arith.divf %141, %142 : vector<1x1xf32>
    %c0_112 = arith.constant 0 : index
    %c0_113 = arith.constant 0 : index
    %c0_114 = arith.constant 0 : index
    %144 = vector.load %arg11[%c0_112, %c0_113, %c0_114] : memref<1x1x1xf32, #tpu.memory_space<vmem>>, vector<1x1x1xf32>
    %145 = vector.shape_cast %144 : vector<1x1x1xf32> to vector<1x1xf32>
    %146 = vector.shape_cast %143 : vector<1x1xf32> to vector<1x1x1xf32>
    tpu.vector_store %arg11[%c0_112, %c0_113, %c0_114], %146 {strides = array<i32>} : memref<1x1x1xf32, #tpu.memory_space<vmem>>, vector<1x1x1xf32>,
    return
  }
  func.func @transform_0(%arg0: i32) -> (i32, i32, i32) {
    %c0_i32 = arith.constant 0 : i32
    %c0_i32_0 = arith.constant 0 : i32
    %c0_i32_1 = arith.constant 0 : i32
    return %arg0, %c0_i32, %c0_i32_0 : i32, i32, i32
  }
  func.func @transform_1(%arg0: i32) -> (i32, i32, i32, i32) {
    %c0_i32 = arith.constant 0 : i32
    %c0_i32_0 = arith.constant 0 : i32
    %c0_i32_1 = arith.constant 0 : i32
    %c0_i32_2 = arith.constant 0 : i32
    return %arg0, %c0_i32, %c0_i32_0, %c0_i32_1 : i32, i32, i32, i32
  }
  func.func @transform_2(%arg0: i32) -> (i32, i32) {
    %c0_i32 = arith.constant 0 : i32
    %c0_i32_0 = arith.constant 0 : i32
    %c0_i32_1 = arith.constant 0 : i32
    return %c0_i32, %c0_i32_0 : i32, i32
  }
  func.func @transform_3(%arg0: i32) -> (i32, i32) {
    %c0_i32 = arith.constant 0 : i32
    %c0_i32_0 = arith.constant 0 : i32
    %c0_i32_1 = arith.constant 0 : i32
    return %c0_i32, %c0_i32_0 : i32, i32
  }
  func.func @transform_4(%arg0: i32) -> (i32, i32, i32) {
    %c0_i32 = arith.constant 0 : i32
    %c0_i32_0 = arith.constant 0 : i32
    %c0_i32_1 = arith.constant 0 : i32
    %c0_i32_2 = arith.constant 0 : i32
    return %c0_i32, %c0_i32_0, %c0_i32_1 : i32, i32, i32
  }
  func.func @transform_5(%arg0: i32) -> (i32, i32, i32) {
    %c0_i32 = arith.constant 0 : i32
    %c0_i32_0 = arith.constant 0 : i32
    %c0_i32_1 = arith.constant 0 : i32
    %c0_i32_2 = arith.constant 0 : i32
    return %c0_i32, %c0_i32_0, %c0_i32_1 : i32, i32, i32
  }
  func.func @transform_6(%arg0: i32) -> (i32, i32) {
    %c0_i32 = arith.constant 0 : i32
    %c0_i32_0 = arith.constant 0 : i32
    %c0_i32_1 = arith.constant 0 : i32
    return %c0_i32, %c0_i32_0 : i32, i32
  }
  func.func @transform_7(%arg0: i32) -> (i32, i32) {
    %c0_i32 = arith.constant 0 : i32
    %c0_i32_0 = arith.constant 0 : i32
    %c0_i32_1 = arith.constant 0 : i32
    return %c0_i32, %c0_i32_0 : i32, i32
  }
  func.func @transform_8(%arg0: i32) -> (i32, i32) {
    %c0_i32 = arith.constant 0 : i32
    %c0_i32_0 = arith.constant 0 : i32
    %c0_i32_1 = arith.constant 0 : i32
    return %c0_i32, %c0_i32_0 : i32, i32
  }
  func.func @transform_9(%arg0: i32) -> (i32, i32) {
    %c0_i32 = arith.constant 0 : i32
    %c0_i32_0 = arith.constant 0 : i32
    %c0_i32_1 = arith.constant 0 : i32
    return %c0_i32, %c0_i32_0 : i32, i32
  }
  func.func @transform_10(%arg0: i32) -> (i32, i32, i32) {
    %c0_i32 = arith.constant 0 : i32
    %c0_i32_0 = arith.constant 0 : i32
    %c0_i32_1 = arith.constant 0 : i32
    return %arg0, %c0_i32, %c0_i32_0 : i32, i32, i32
  }
}

</mosaic_0001>

<bundles_post_ra>
// kernel: tpu_custom_call.1
= control target key start
LH: loop header
LB: loop body
LE: loop exit
PB: predicated region body
PF: predicated region fallthrough
CT: control target
= control target key end

     0   :  { %s2068_s15 = smov 0   ;;  %s2345_s0 = inlined_call_operand.vmem [shape: f32[2,16,16], index: 0, kind: input, shape index: {}]   ;;  %s2346_s1 = inlined_call_operand.vmem [shape: bf16[2,3,16,16], index: 1, kind: input, shape index: {}]   ;;  %s2347_s2 = inlined_call_operand.vmem [shape: bf16[16,128], index: 2, kind: input, shape index: {}]   ;;  %s2348_s3 = inlined_call_operand.vmem [shape: f32[1,32], index: 3, kind: input, shape index: {}]   ;;  %s2349_s4 = inlined_call_operand.vmem [shape: bf16[3,32,128], index: 4, kind: input, shape index: {}]   ;;  %s2350_s5 = inlined_call_operand.vmem [shape: f32[3,1,32], index: 5, kind: input, shape index: {}]   ;;  %s2351_s6 = inlined_call_operand.vmem [shape: f32[128,64], index: 6, kind: input, shape index: {}]   ;;  %s2352_s7 = inlined_call_operand.vmem [shape: f32[1,64], index: 7, kind: input, shape index: {}]   ;;  %s2353_s8 = inlined_call_operand.vmem [shape: f32[64,1], index: 8, kind: input, shape index: {}]   ;;  %s2354_s9 = inlined_call_operand.<no memory space> [shape: f32[1,1], index: 9, kind: input, shape index: {}]   ;;  %s2355_s10 = inlined_call_operand.vmem [shape: f32[2,1,1], index: 10, kind: output, shape index: {}]  }
   0x1   :  { %v15_v0 = vstv %s2354_s9 }
   0x2   :  { %16 = vst [vmem:[#allocation3] sm:$0x1] %v15_v0 }
   0x3 LB: > { %s1649_s16 = sadd.s32 4294967295, %s2003_s15   ;;  %p1653_p0 = scmp.ge.s32.totalorder %s2003_s15, 1  ;;  %s2003_s15 = sphi %s2068_s15, %s22_s15  }
   0x4   : > { %p324_p1 = scmp.lt.s32.totalorder %s2003_s15, 3 }
   0x6   : > { %p325_p2 = pnand %p1653_p0, %p324_p1 }
   0x7   : > { %p365_p3 = scmp.lt.s32.totalorder (!%p325_p2), %s1649_s16, 1  ;;  %s2007_s26 = smov (!%p325_p2), 32  }
   0x8   : > { %328 = sbr.rel (%p325_p2) target bundleno = 2742 (0xab6), region = 60  ;;  %s2008_s27 = smov (!%p325_p2), 96  }
   0x9   : > { %s2009_s28 = smov (!%p325_p2), 64  }
   0xd   : > { %v1958_v1 = vld [vmem:[%s2347_s2] sm:$0xff]   ;;  %v2005_v2 = vmov 0.0   ;;  %vm2006_vm0 = vmmov 0   ;;  %s2357_s16 = smov (!%p365_p3, %s1649_s16), 1  ;;  %vm391_vm1 = vcmask 130048   ;;  %v1962_v17 = vld [vmem:[%s2349_s4 + $0x8] sm:$0xff]  }
   0xe   : > { %1788 = vmatprep.subr.bf16.mxu1 %v2005_v2  ;;  %1800 = vmatprep.subr.bf16.mxu0 %v2005_v2  ;;  %s1726_s9 = sshll.u32 %s2357_s16, 4  ;;  %s1944_s19 = smul.u32 24, %s2357_s16  ;;  %v1963_v18 = vld [vmem:[%s2349_s4] sm:$0xff]   ;;  %vm618_vm2 = vcmask 261120   ;;  %vm630_vm3 = vcmask 253952   ;;  %v1967_v0 = vld [vmem:[%s2349_s4 + $0x18] sm:$0xff]  }
   0xf   : > { %1789 = vmatpush3.bf16.msra.mxu1 %v1958_v1  ;;  %1790 = vmatprep.mubr.msk.bf16.mxu1 %vm2006_vm0, %v2005_v2  ;;  %s369_s22 = scalar_lea.vmem %s2345_s0, %s1726_s9  ;;  %v1659_v19 = vld [vmem:[%s2348_s3] ss:$0 sm:$0xff]  ;;  %v1968_v1 = vld [vmem:[%s2349_s4 + $0x10] sm:$0xff]   ;;  %vm888_vm4 = vcmask 516352   ;;  %vm1148_vm5 = vcmask 778752   ;;  %vm1408_vm6 = vcmask 1041152   ;;  %s377_s11 = scalar_lea.vmem %s2355_s10, %s2357_s16 }
  0x10   : > { %1794 = vmatprep.subr.bf16.mxu1 %v2005_v2  ;;  %1802 = vmatprep.mubr.msk.bf16.mxu0 %vm2006_vm0, %v2005_v2  ;;  %s2096_s25 = scalar_lea.vmem %s2346_s1, %s1944_s19  ;;  %v379_v3 = vld [vmem:[%s369_s22] sm:$0xff]  ;;  %v380_v4 = vld [vmem:[%s369_s22 + $0x8] sm:$0xff]  ;;  %vm1508_vm7 = vcmask 523264   ;;  %vm1588_vm8 = vcmask 0  }
  0x11   : > { %v381_v5 = vpack.c.bf16 %v380_v4, %v379_v3  ;;  %v1959_v12 = vld [vmem:[%s2096_s25] sm:$0xff]   ;;  %v1960_v15 = vld [vmem:[%s2096_s25 + $0x8] sm:$0xff]   ;;  %v1961_v16 = vld [vmem:[%s2096_s25 + $0x10] sm:$0xff]  }
  0x12   : > { %v1964_v60 = vld [vmem:[%s2096_s25] sm:$0xff]   ;;  %v1965_v61 = vld [vmem:[%s2096_s25 + $0x8] sm:$0xff]   ;;  %v1966_v63 = vld [vmem:[%s2096_s25 + $0x10] sm:$0xff]  }
  0x13   : > { %1791 = vmatmul.mubr.msk.bf16.vlgmr.msra.gmra.mxu1 %vm391_vm1, %v381_v5  ;;  %v1673_v3 = vld [vmem:[%s2350_s5] ss:$0 sm:$0xff] }
  0x14   : > { %1796 = vmatprep.mubr.msk.bf16.mxu1 %vm2006_vm0, %v2005_v2 }
  0xd3   : > { %v429_v6 = vpop.f32.mrf.mxu1 }
  0xd4   : > { %v442_v22 = vadd.f32 %v1659_v19, %v429_v6 }
  0xd5   : > { %v1792_v7 = vpop.f32.mrf.mxu1 }
  0xd7   : > { %v432_v8 = vpop.f32.mrf.mxu1 }
  0xd8   : > { %v444_v9 = vpack.c.bf16 %v432_v8, %v429_v6  ;;  %v443_v28 = vadd.f32 %v1659_v19, %v432_v8 }
  0xd9   : > { %v1793_v10 = vpop.f32.mrf.mxu1 }
  0xda   : > { %567 = vrot.lane.b32.xlu1 %v444_v9, %s2007_s26  ;;  %453 = vrot.lane.b32.xlu0 %v444_v9, %s2008_s27 }
  0xde   : > { %510 = vrot.lane.b32.xlu0 %v444_v9, %s2009_s28 }
 0x14c   : > { %v454_v11 = vpop.permute.xlu0 %453  ;;  %v568_v13 = vpop.permute.xlu1 %567 }
 0x14d   : > { %1795 = vmatpush3.bf16.msra.mxu1 %v454_v11 }
 0x14e   : > { %1806 = vmatprep.subr.bf16.mxu1 %v2005_v2 }
 0x150   : > { %1797 = vmatmul.mubr.msk.bf16.vlgmr.msra.gmra.mxu1 %vm391_vm1, %v1959_v12  ;;  %v511_v14 = vpop.permute.xlu0 %510 }
 0x151   : > { %1801 = vmatpush3.bf16.msra.mxu0 %v511_v14  ;;  %1807 = vmatpush3.bf16.msra.mxu1 %v568_v13 }
 0x152   : > { %1808 = vmatprep.mubr.msk.bf16.mxu1 %vm2006_vm0, %v2005_v2  ;;  %1812 = vmatprep.subr.bf16.mxu0 %v2005_v2 }
 0x153   : > { %1820 = vmatprep.subr.bf16.mxu1 %v2005_v2 }
 0x154   : > { %1803 = vmatmul.mubr.msk.bf16.vlgmr.msra.gmra.mxu0 %vm391_vm1, %v1960_v15 }
 0x155   : > { %1816 = vmatprep.mubr.msk.bf16.mxu0 %vm2006_vm0, %v2005_v2  ;;  %1813 = vmatpush3.bf16.msra.mxu0 %v1962_v17 }
 0x156   : > { %1814 = vmatprep.subr.bf16.mxu0 %v2005_v2 }
 0x158   : > { %1809 = vmatmul.mubr.msk.bf16.vlgmr.msra.gmra.mxu1 %vm391_vm1, %v1961_v16 }
 0x159   : > { %1822 = vmatprep.mubr.msk.bf16.mxu1 %vm2006_vm0, %v2005_v2  ;;  %1815 = vmatpush3.bf16.msra.mxu0 %v1963_v18 }
 0x15a   : > { %1826 = vmatprep.subr.bf16.mxu0 %v2005_v2 }
 0x210   : > { %v493_v20 = vpop.f32.mrf.mxu1 }
 0x211   : > { %v500_v25 = vadd.f32 %v493_v20, %v442_v22 }
 0x212   : > { %v1798_v21 = vpop.f32.mrf.mxu1 }
 0x214   : > { %v496_v23 = vpop.f32.mrf.mxu1  ;;  %v550_v24 = vpop.f32.mrf.mxu0 }
 0x215   : > { %v557_v29 = vadd.f32 %v550_v24, %v500_v25  ;;  %v501_v32 = vadd.f32 %v496_v23, %v443_v28 }
 0x216   : > { %v1799_v26 = vpop.f32.mrf.mxu1  ;;  %v1804_v27 = vpop.f32.mrf.mxu0 }
 0x218   : > { %v553_v30 = vpop.f32.mrf.mxu0  ;;  %v607_v31 = vpop.f32.mrf.mxu1 }
 0x219   : > { %v614_v33 = vadd.f32 %v607_v31, %v557_v29  ;;  %v558_v36 = vadd.f32 %v553_v30, %v501_v32 }
 0x21a   : > { %v1805_v34 = vpop.f32.mrf.mxu0  ;;  %v1810_v35 = vpop.f32.mrf.mxu1 }
 0x21b   : > { %1977 = vtanh.f32 %v614_v33 }
 0x21c   : > { %v610_v37 = vpop.f32.mrf.mxu1 }
 0x21d   : > { %v615_v38 = vadd.f32 %v610_v37, %v558_v36  ;;  %v1969_v37 = vld [vmem:[%s2096_s25] sm:$0xff]  }
 0x21e   : > { %v1811_v39 = vpop.f32.mrf.mxu1 }
 0x21f   : > { %1979 = vtanh.f32 %v615_v38  ;;  %v1970_v38 = vld [vmem:[%s2096_s25 + $0x8] sm:$0xff]  }
 0x228   : > { %v1978_v40 = vpop.eup %1977 }
 0x229   : > { %v619_v43 = vsel %vm618_vm2, %v1978_v40, 0.0 }
 0x22c   : > { %v1980_v41 = vpop.eup %1979 }
 0x22d   : > { %v632_v42 = vpack.c.bf16 %v1980_v41, %v1978_v40  ;;  %v620_v44 = vsel %vm618_vm2, %v1980_v41, 0.0  ;;  %v1971_v40 = vld [vmem:[%s2096_s25 + $0x10] sm:$0xff]   ;;  %v1972_v41 = vld [vmem:[%s2349_s4 + $0x28] sm:$0xff]  }
 0x22e   : > { %v621_v45 = vadd.f32 %v620_v44, %v619_v43  ;;  %v1692_v43 = vld [vmem:[%s2350_s5 + $0x1] ss:$0 sm:$0xff] }
 0x22f   : > { %1817 = vmatmul.mubr.msk.bf16.vlgmr.msra.gmra.mxu0 %vm618_vm2, %v632_v42  ;;  %v1973_v42 = vld [vmem:[%s2349_s4 + $0x20] sm:$0xff]  }
 0x230   : > { %1828 = vmatprep.mubr.msk.bf16.mxu0 %vm2006_vm0, %v2005_v2  ;;  %v622_v46 = vrot.slane %v621_v45, 4 }
 0x232   : > { %v623_v47 = vadd.f32 %v622_v46, %v621_v45 }
 0x234   : > { %v624_v48 = vrot.slane %v623_v47, 2 }
 0x236   : > { %v625_v49 = vadd.f32 %v624_v48, %v623_v47 }
 0x238   : > { %v626_v50 = vrot.slane %v625_v49, 1 }
 0x23a   : > { %v627_v51 = vadd.f32 %v626_v50, %v625_v49 }
 0x23c   : > { %v629_v52 = vmul.f32 0.0625, %v627_v51 }
 0x23e   : > { %631 = vst.msk [vmem:[#allocation2] sm:$0x1] %vm630_vm3, %v629_v52 }
 0x2ef   : > { %v687_v53 = vpop.f32.mrf.mxu0 }
 0x2f0   : > { %v700_v6 = vadd.f32 %v1673_v3, %v687_v53 }
 0x2f1   : > { %v1818_v54 = vpop.f32.mrf.mxu0 }
 0x2f3   : > { %v690_v55 = vpop.f32.mrf.mxu0 }
 0x2f4   : > { %v702_v56 = vpack.c.bf16 %v690_v55, %v687_v53  ;;  %v701_v12 = vadd.f32 %v1673_v3, %v690_v55 }
 0x2f5   : > { %v1819_v57 = vpop.f32.mrf.mxu0 }
 0x2f6   : > { %767 = vrot.lane.b32.xlu0 %v702_v56, %s2009_s28  ;;  %711 = vrot.lane.b32.xlu1 %v702_v56, %s2008_s27 }
 0x2fa   : > { %823 = vrot.lane.b32.xlu1 %v702_v56, %s2007_s26 }
 0x368   : > { %v768_v58 = vpop.permute.xlu0 %767  ;;  %v712_v59 = vpop.permute.xlu1 %711 }
 0x369   : > { %1821 = vmatpush3.bf16.msra.mxu1 %v712_v59  ;;  %1827 = vmatpush3.bf16.msra.mxu0 %v768_v58 }
 0x36a   : > { %1832 = vmatprep.subr.bf16.mxu1 %v2005_v2  ;;  %1838 = vmatprep.subr.bf16.mxu0 %v2005_v2 }
 0x36c   : > { %1823 = vmatmul.mubr.msk.bf16.vlgmr.msra.gmra.mxu1 %vm391_vm1, %v1964_v60  ;;  %1829 = vmatmul.mubr.msk.bf16.vlgmr.msra.gmra.mxu0 %vm391_vm1, %v1965_v61  ;;  %v824_v62 = vpop.permute.xlu1 %823 }
 0x36d   : > { %1833 = vmatpush3.bf16.msra.mxu1 %v824_v62  ;;  %1834 = vmatprep.mubr.msk.bf16.mxu1 %vm2006_vm0, %v2005_v2 }
 0x36e   : > { %1842 = vmatprep.mubr.msk.bf16.mxu0 %vm2006_vm0, %v2005_v2  ;;  %1846 = vmatprep.subr.bf16.mxu1 %v2005_v2 }
 0x36f   : > { %1839 = vmatpush3.bf16.msra.mxu0 %v1967_v0 }
 0x370   : > { %1840 = vmatprep.subr.bf16.mxu0 %v2005_v2 }
 0x373   : > { %1841 = vmatpush3.bf16.msra.mxu0 %v1968_v1 }
 0x374   : > { %1835 = vmatmul.mubr.msk.bf16.vlgmr.msra.gmra.mxu1 %vm391_vm1, %v1966_v63  ;;  %1852 = vmatprep.subr.bf16.mxu0 %v2005_v2 }
 0x375   : > { %1848 = vmatprep.mubr.msk.bf16.mxu1 %vm2006_vm0, %v2005_v2 }
 0x42c   : > { %v751_v4 = vpop.f32.mrf.mxu1  ;;  %v807_v5 = vpop.f32.mrf.mxu0 }
 0x42d   : > { %v758_v9 = vadd.f32 %v751_v4, %v700_v6 }
 0x42e   : > { %v1824_v7 = vpop.f32.mrf.mxu1  ;;  %v1830_v8 = vpop.f32.mrf.mxu0 }
 0x42f   : > { %v814_v15 = vadd.f32 %v807_v5, %v758_v9 }
 0x430   : > { %v754_v10 = vpop.f32.mrf.mxu1  ;;  %v810_v11 = vpop.f32.mrf.mxu0 }
 0x431   : > { %v759_v16 = vadd.f32 %v754_v10, %v701_v12 }
 0x432   : > { %v1825_v13 = vpop.f32.mrf.mxu1  ;;  %v1831_v14 = vpop.f32.mrf.mxu0 }
 0x433   : > { %v815_v20 = vadd.f32 %v810_v11, %v759_v16 }
 0x434   : > { %v863_v17 = vpop.f32.mrf.mxu1 }
 0x435   : > { %v870_v18 = vadd.f32 %v863_v17, %v814_v15 }
 0x436   : > { %v1836_v19 = vpop.f32.mrf.mxu1 }
 0x437   : > { %1981 = vtanh.f32 %v870_v18 }
 0x438   : > { %v866_v21 = vpop.f32.mrf.mxu1 }
 0x439   : > { %v871_v22 = vadd.f32 %v866_v21, %v815_v20 }
 0x43a   : > { %v1837_v23 = vpop.f32.mrf.mxu1 }
 0x43b   : > { %1983 = vtanh.f32 %v871_v22 }
 0x444   : > { %v1982_v24 = vpop.eup %1981 }
 0x445   : > { %v874_v27 = vsel %vm618_vm2, %v1982_v24, 0.0 }
 0x448   : > { %v1984_v25 = vpop.eup %1983 }
 0x449   : > { %v890_v26 = vpack.c.bf16 %v1984_v25, %v1982_v24  ;;  %v875_v28 = vsel %vm618_vm2, %v1984_v25, 0.0 }
 0x44a   : > { %v2166_v29 = vadd.f32 %v875_v28, %v874_v27  ;;  %v1974_v28 = vld [vmem:[%s2096_s25] sm:$0xff]  }
 0x44b   : > { %1843 = vmatmul.mubr.msk.bf16.vlgmr.msra.gmra.mxu0 %vm618_vm2, %v890_v26 }
 0x44c   : > { %1854 = vmatprep.mubr.msk.bf16.mxu0 %vm2006_vm0, %v2005_v2  ;;  %v877_v7 = vrot.slane %v2166_v29, 4 }
 0x44e   : > { %v878_v8 = vadd.f32 %v877_v7, %v2166_v29  ;;  %v1975_v29 = vld [vmem:[%s2096_s25 + $0x8] sm:$0xff]  }
 0x450   : > { %v879_v10 = vrot.slane %v878_v8, 2 }
 0x452   : > { %v880_v12 = vadd.f32 %v879_v10, %v878_v8  ;;  %v1414_v10 = vld [vmem:[%s2351_s6 + $0x18] sm:$0xff] }
 0x454   : > { %v881_v15 = vrot.slane %v880_v12, 1 }
 0x456   : > { %v882_v20 = vadd.f32 %v881_v15, %v880_v12  ;;  %v1411_v15 = vld [vmem:[%s2351_s6] sm:$0xff] }
 0x458   : > { %v883_v23 = vmul.f32 0.0625, %v882_v20 }
 0x50b   : > { %v947_v30 = vpop.f32.mrf.mxu0 }
 0x50c   : > { %v960_v46 = vadd.f32 %v1692_v43, %v947_v30 }
 0x50d   : > { %v1844_v31 = vpop.f32.mrf.mxu0 }
 0x50f   : > { %v950_v32 = vpop.f32.mrf.mxu0 }
 0x510   : > { %v962_v33 = vpack.c.bf16 %v950_v32, %v947_v30  ;;  %v961_v52 = vadd.f32 %v1692_v43, %v950_v32  ;;  %v1417_v43 = vld [vmem:[%s2351_s6 + $0x30] sm:$0xff] }
 0x511   : > { %v1845_v34 = vpop.f32.mrf.mxu0 }
 0x512   : > { %1027 = vrot.lane.b32.xlu1 %v962_v33, %s2009_s28  ;;  %971 = vrot.lane.b32.xlu0 %v962_v33, %s2008_s27  ;;  %v1426_v34 = vld [vmem:[%s2351_s6 + $0x78] sm:$0xff] }
 0x516   : > { %1083 = vrot.lane.b32.xlu0 %v962_v33, %s2007_s26  ;;  %v1976_v33 = vld [vmem:[%s2096_s25 + $0x10] sm:$0xff]  }
 0x584   : > { %v1028_v35 = vpop.permute.xlu1 %1027  ;;  %v972_v36 = vpop.permute.xlu0 %971 }
 0x585   : > { %1847 = vmatpush3.bf16.msra.mxu1 %v972_v36  ;;  %1853 = vmatpush3.bf16.msra.mxu0 %v1028_v35  ;;  %v1425_v35 = vld [vmem:[%s2351_s6 + $0x70] sm:$0xff]  ;;  %v1424_v36 = vld [vmem:[%s2351_s6 + $0x68] sm:$0xff] }
 0x586   : > { %1858 = vmatprep.subr.bf16.mxu1 %v2005_v2  ;;  %1864 = vmatprep.subr.bf16.mxu0 %v2005_v2 }
 0x588   : > { %1849 = vmatmul.mubr.msk.bf16.vlgmr.msra.gmra.mxu1 %vm391_vm1, %v1969_v37  ;;  %1855 = vmatmul.mubr.msk.bf16.vlgmr.msra.gmra.mxu0 %vm391_vm1, %v1970_v38  ;;  %v1084_v39 = vpop.permute.xlu0 %1083  ;;  %v1423_v37 = vld [vmem:[%s2351_s6 + $0x60] sm:$0xff]  ;;  %v1422_v38 = vld [vmem:[%s2351_s6 + $0x58] sm:$0xff] }
 0x589   : > { %1859 = vmatpush3.bf16.msra.mxu1 %v1084_v39  ;;  %1860 = vmatprep.mubr.msk.bf16.mxu1 %vm2006_vm0, %v2005_v2  ;;  %v1421_v39 = vld [vmem:[%s2351_s6 + $0x50] sm:$0xff] }
 0x58a   : > { %1868 = vmatprep.mubr.msk.bf16.mxu0 %vm2006_vm0, %v2005_v2  ;;  %1872 = vmatprep.subr.bf16.mxu1 %v2005_v2 }
 0x58b   : > { %1865 = vmatpush3.bf16.msra.mxu0 %v1972_v41  ;;  %v1419_v41 = vld [vmem:[%s2351_s6 + $0x40] sm:$0xff] }
 0x58c   : > { %1866 = vmatprep.subr.bf16.mxu0 %v2005_v2 }
 0x58f   : > { %1867 = vmatpush3.bf16.msra.mxu0 %v1973_v42  ;;  %v1418_v42 = vld [vmem:[%s2351_s6 + $0x38] sm:$0xff] }
 0x590   : > { %1861 = vmatmul.mubr.msk.bf16.vlgmr.msra.gmra.mxu1 %vm391_vm1, %v1971_v40  ;;  %1878 = vmatprep.subr.bf16.mxu0 %v2005_v2  ;;  %v1420_v40 = vld [vmem:[%s2351_s6 + $0x48] sm:$0xff] }
 0x591   : > { %1874 = vmatprep.mubr.msk.bf16.mxu1 %vm2006_vm0, %v2005_v2 }
 0x648   : > { %v1011_v44 = vpop.f32.mrf.mxu1  ;;  %v1067_v45 = vpop.f32.mrf.mxu0 }
 0x649   : > { %v1018_v49 = vadd.f32 %v1011_v44, %v960_v46  ;;  %v1416_v44 = vld [vmem:[%s2351_s6 + $0x28] sm:$0xff]  ;;  %v1711_v46 = vld [vmem:[%s2350_s5 + $0x2] ss:$0 sm:$0xff] }
 0x64a   : > { %v1850_v47 = vpop.f32.mrf.mxu1  ;;  %v1856_v48 = vpop.f32.mrf.mxu0 }
 0x64b   : > { %v1074_v55 = vadd.f32 %v1067_v45, %v1018_v49  ;;  %v1415_v45 = vld [vmem:[%s2351_s6 + $0x20] sm:$0xff] }
 0x64c   : > { %v1014_v50 = vpop.f32.mrf.mxu1  ;;  %v1070_v51 = vpop.f32.mrf.mxu0 }
 0x64d   : > { %v1019_v56 = vadd.f32 %v1014_v50, %v961_v52 }
 0x64e   : > { %v1851_v53 = vpop.f32.mrf.mxu1  ;;  %v1857_v54 = vpop.f32.mrf.mxu0 }
 0x64f   : > { %v1075_v60 = vadd.f32 %v1070_v51, %v1019_v56 }
 0x650   : > { %v1123_v57 = vpop.f32.mrf.mxu1 }
 0x651   : > { %v1130_v58 = vadd.f32 %v1123_v57, %v1074_v55 }
 0x652   : > { %v1862_v59 = vpop.f32.mrf.mxu1 }
 0x653   : > { %1985 = vtanh.f32 %v1130_v58 }
 0x654   : > { %v1126_v61 = vpop.f32.mrf.mxu1 }
 0x655   : > { %v1131_v62 = vadd.f32 %v1126_v61, %v1075_v60 }
 0x656   : > { %v1863_v63 = vpop.f32.mrf.mxu1 }
 0x657   : > { %1987 = vtanh.f32 %v1131_v62 }
 0x660   : > { %v1986_v0 = vpop.eup %1985 }
 0x661   : > { %v1134_v4 = vsel %vm618_vm2, %v1986_v0, 0.0 }
 0x664   : > { %v1988_v1 = vpop.eup %1987 }
 0x665   : > { %v1150_v3 = vpack.c.bf16 %v1988_v1, %v1986_v0  ;;  %v1135_v5 = vsel %vm618_vm2, %v1988_v1, 0.0 }
 0x666   : > { %v1136_v6 = vadd.f32 %v1135_v5, %v1134_v4 }
 0x667   : > { %1869 = vmatmul.mubr.msk.bf16.vlgmr.msra.gmra.mxu0 %vm618_vm2, %v1150_v3 }
 0x668   : > { %1880 = vmatprep.mubr.msk.bf16.mxu0 %vm2006_vm0, %v2005_v2  ;;  %v1137_v9 = vrot.slane %v1136_v6, 4 }
 0x66a   : > { %v1138_v11 = vadd.f32 %v1137_v9, %v1136_v6 }
 0x66c   : > { %v1139_v13 = vrot.slane %v1138_v11, 2 }
 0x66e   : > { %v1140_v16 = vadd.f32 %v1139_v13, %v1138_v11  ;;  %v1413_v11 = vld [vmem:[%s2351_s6 + $0x10] sm:$0xff]  ;;  %v1412_v13 = vld [vmem:[%s2351_s6 + $0x8] sm:$0xff] }
 0x670   : > { %v1141_v21 = vrot.slane %v1140_v16, 1 }
 0x672   : > { %v1142_v24 = vadd.f32 %v1141_v21, %v1140_v16  ;;  %v1504_v21 = vld [vmem:[%s2353_s8 + $0x28] sm:$0xff] }
 0x674   : > { %v1143_v25 = vmul.f32 0.0625, %v1142_v24  ;;  %v1502_v24 = vld [vmem:[%s2353_s8 + $0x18] sm:$0xff] }
 0x727   : > { %v2207_v14 = vpop.f32.mrf.mxu0 }
 0x728   : > { %v1220_v49 = vadd.f32 %v1711_v46, %v2207_v14 }
 0x729   : > { %v1870_v17 = vpop.f32.mrf.mxu0 }
 0x72b   : > { %v2209_v18 = vpop.f32.mrf.mxu0 }
 0x72c   : > { %v1222_v19 = vpack.c.bf16 %v2209_v18, %v2207_v14  ;;  %v1221_v55 = vadd.f32 %v1711_v46, %v2209_v18  ;;  %v1506_v18 = vld [vmem:[%s2353_s8 + $0x38] sm:$0xff] }
 0x72d   : > { %v1871_v22 = vpop.f32.mrf.mxu0 }
 0x72e   : > { %1287 = vrot.lane.b32.xlu0 %v1222_v19, %s2009_s28  ;;  %1231 = vrot.lane.b32.xlu1 %v1222_v19, %s2008_s27 }
 0x732   : > { %885 = vrot.lane.b32.xlu0 %v883_v23, %s2007_s26  ;;  %1343 = vrot.lane.b32.xlu1 %v1222_v19, %s2007_s26  ;;  %v1505_v19 = vld [vmem:[%s2353_s8 + $0x30] sm:$0xff]  ;;  %v1503_v23 = vld [vmem:[%s2353_s8 + $0x20] sm:$0xff] }
 0x736   : > { %1145 = vrot.lane.b32.xlu1 %v1143_v25, %s2009_s28 }
 0x7a0   : > { %v1288_v26 = vpop.permute.xlu0 %1287  ;;  %v1232_v27 = vpop.permute.xlu1 %1231 }
 0x7a1   : > { %1873 = vmatpush3.bf16.msra.mxu1 %v1232_v27  ;;  %1879 = vmatpush3.bf16.msra.mxu0 %v1288_v26  ;;  %v1501_v27 = vld [vmem:[%s2353_s8 + $0x10] sm:$0xff] }
 0x7a2   : > { %1884 = vmatprep.subr.bf16.mxu1 %v2005_v2  ;;  %1890 = vmatprep.subr.mxu0 %v2005_v2 }
 0x7a4   : > { %v886_v30 = vpop.permute.xlu0 %885  ;;  %1875 = vmatmul.mubr.msk.bf16.vlgmr.msra.gmra.mxu1 %vm391_vm1, %v1974_v28  ;;  %v1344_v31 = vpop.permute.xlu1 %1343  ;;  %1881 = vmatmul.mubr.msk.bf16.vlgmr.msra.gmra.mxu0 %vm391_vm1, %v1975_v29  ;;  %v1500_v28 = vld [vmem:[%s2353_s8 + $0x8] sm:$0xff]  ;;  %v1499_v29 = vld [vmem:[%s2353_s8] sm:$0xff] }
 0x7a5   : > { %889 = vst.msk [vmem:[#allocation2] sm:$0x1] %vm888_vm4, %v886_v30  ;;  %1885 = vmatpush3.bf16.msra.mxu1 %v1344_v31  ;;  %1886 = vmatprep.mubr.msk.bf16.mxu1 %vm2006_vm0, %v2005_v2  ;;  %v1427_v30 = vld [vmem:[%s2352_s7] sm:$0x1] }
 0x7a6   : > { %1922 = vmatprep.mubr.msk.f32.mxu0 %vm2006_vm0, %v2005_v2  ;;  %1925 = vmatprep.subr.mxu1 %v2005_v2 }
 0x7a7   : > { %1891 = vmatpush3.msra.mxu0 %v1426_v34 }
 0x7a8   : > { %v1146_v32 = vpop.permute.xlu1 %1145  ;;  %1892 = vmatprep.subr.mxu0 %v2005_v2 }
 0x7a9   : > { %1149 = vst.msk [vmem:[#allocation2] sm:$0x1] %vm1148_vm5, %v1146_v32  ;;  %1893 = vmatpush3.msra.mxu0 %v1425_v35  ;;  %v1507_v35 = vld [vmem:[#allocation3] sm:$0x1] }
 0x7aa   : > { %1894 = vmatprep.subr.mxu0 %v2005_v2 }
 0x7ab   : > { %1895 = vmatpush3.msra.mxu0 %v1424_v36 }
 0x7ac   : > { %1887 = vmatmul.mubr.msk.bf16.vlgmr.msra.gmra.mxu1 %vm391_vm1, %v1976_v33  ;;  %1896 = vmatprep.subr.mxu0 %v2005_v2 }
 0x7ad   : > { %1941 = vmatprep.mubr.msk.f32.mxu1 %vm2006_vm0, %v2005_v2  ;;  %1897 = vmatpush3.msra.mxu0 %v1423_v37 }
 0x7ae   : > { %1898 = vmatprep.subr.mxu0 %v2005_v2  ;;  %1926 = vmatpush3.msra.mxu1 %v1506_v18 }
 0x7af   : > { %1899 = vmatpush3.msra.mxu0 %v1422_v38  ;;  %1927 = vmatprep.subr.mxu1 %v2005_v2 }
 0x7b0   : > { %1900 = vmatprep.subr.mxu0 %v2005_v2  ;;  %1928 = vmatpush3.msra.mxu1 %v1505_v19 }
 0x7b1   : > { %1901 = vmatpush3.msra.mxu0 %v1421_v39  ;;  %1929 = vmatprep.subr.mxu1 %v2005_v2 }
 0x7b2   : > { %1902 = vmatprep.subr.mxu0 %v2005_v2  ;;  %1930 = vmatpush3.msra.mxu1 %v1504_v21 }
 0x7b3   : > { %1903 = vmatpush3.msra.mxu0 %v1420_v40  ;;  %1931 = vmatprep.subr.mxu1 %v2005_v2 }
 0x7b4   : > { %1904 = vmatprep.subr.mxu0 %v2005_v2  ;;  %1932 = vmatpush3.msra.mxu1 %v1503_v23 }
 0x7b5   : > { %1905 = vmatpush3.msra.mxu0 %v1419_v41  ;;  %1933 = vmatprep.subr.mxu1 %v2005_v2 }
 0x7b6   : > { %1906 = vmatprep.subr.mxu0 %v2005_v2  ;;  %1934 = vmatpush3.msra.mxu1 %v1502_v24 }
 0x7b7   : > { %1907 = vmatpush3.msra.mxu0 %v1418_v42  ;;  %1935 = vmatprep.subr.mxu1 %v2005_v2 }
 0x7b8   : > { %1908 = vmatprep.subr.mxu0 %v2005_v2  ;;  %1936 = vmatpush3.msra.mxu1 %v1501_v27 }
 0x7b9   : > { %1909 = vmatpush3.msra.mxu0 %v1417_v43  ;;  %1937 = vmatprep.subr.mxu1 %v2005_v2 }
 0x7ba   : > { %1910 = vmatprep.subr.mxu0 %v2005_v2  ;;  %1938 = vmatpush3.msra.mxu1 %v1500_v28 }
 0x7bb   : > { %1911 = vmatpush3.msra.mxu0 %v1416_v44  ;;  %1939 = vmatprep.subr.mxu1 %v2005_v2 }
 0x7bc   : > { %1912 = vmatprep.subr.mxu0 %v2005_v2  ;;  %1940 = vmatpush3.msra.mxu1 %v1499_v29 }
 0x7bd   : > { %1913 = vmatpush3.msra.mxu0 %v1415_v45 }
 0x7be   : > { %1914 = vmatprep.subr.mxu0 %v2005_v2 }
 0x7bf   : > { %1915 = vmatpush3.msra.mxu0 %v1414_v10 }
 0x7c0   : > { %1916 = vmatprep.subr.mxu0 %v2005_v2 }
 0x7c1   : > { %1917 = vmatpush3.msra.mxu0 %v1413_v11 }
 0x7c2   : > { %1918 = vmatprep.subr.mxu0 %v2005_v2 }
 0x7c3   : > { %1919 = vmatpush3.msra.mxu0 %v1412_v13 }
 0x7c4   : > { %1920 = vmatprep.subr.mxu0 %v2005_v2 }
 0x7c5   : > { %1921 = vmatpush3.msra.mxu0 %v1411_v15 }
 0x864   : > { %v1271_v47 = vpop.f32.mrf.mxu1  ;;  %v1327_v48 = vpop.f32.mrf.mxu0 }
 0x865   : > { %v1278_v52 = vadd.f32 %v1271_v47, %v1220_v49 }
 0x866   : > { %v1876_v50 = vpop.f32.mrf.mxu1  ;;  %v1882_v51 = vpop.f32.mrf.mxu0 }
 0x867   : > { %v1334_v58 = vadd.f32 %v1327_v48, %v1278_v52 }
 0x868   : > { %v1274_v53 = vpop.f32.mrf.mxu1  ;;  %v1330_v54 = vpop.f32.mrf.mxu0 }
 0x869   : > { %v1279_v59 = vadd.f32 %v1274_v53, %v1221_v55 }
 0x86a   : > { %v1877_v56 = vpop.f32.mrf.mxu1  ;;  %v1883_v57 = vpop.f32.mrf.mxu0 }
 0x86b   : > { %v1335_v63 = vadd.f32 %v1330_v54, %v1279_v59 }
 0x86c   : > { %v1383_v60 = vpop.f32.mrf.mxu1 }
 0x86d   : > { %v1390_v61 = vadd.f32 %v1383_v60, %v1334_v58 }
 0x86e   : > { %v1888_v62 = vpop.f32.mrf.mxu1 }
 0x86f   : > { %1989 = vtanh.f32 %v1390_v61 }
 0x870   : > { %v1386_v0 = vpop.f32.mrf.mxu1 }
 0x871   : > { %v1391_v1 = vadd.f32 %v1386_v0, %v1335_v63 }
 0x872   : > { %v1889_v3 = vpop.f32.mrf.mxu1 }
 0x873   : > { %1991 = vtanh.f32 %v1391_v1 }
 0x87c   : > { %v1990_v4 = vpop.eup %1989 }
 0x87d   : > { %v1394_v6 = vsel %vm618_vm2, %v1990_v4, 0.0 }
 0x880   : > { %v1992_v5 = vpop.eup %1991 }
 0x881   : > { %v1395_v7 = vsel %vm618_vm2, %v1992_v5, 0.0 }
 0x882   : > { %v1396_v8 = vadd.f32 %v1395_v7, %v1394_v6 }
 0x884   : > { %v1397_v9 = vrot.slane %v1396_v8, 4 }
 0x886   : > { %v1398_v12 = vadd.f32 %v1397_v9, %v1396_v8 }
 0x888   : > { %v1399_v14 = vrot.slane %v1398_v12, 2 }
 0x88a   : > { %v1400_v16 = vadd.f32 %v1399_v14, %v1398_v12 }
 0x88c   : > { %v1401_v17 = vrot.slane %v1400_v16, 1 }
 0x88e   : > { %v1402_v20 = vadd.f32 %v1401_v17, %v1400_v16 }
 0x890   : > { %v1403_v22 = vmul.f32 0.0625, %v1402_v20 }
 0x892   : > { %1405 = vrot.lane.b32.xlu0 %v1403_v22, %s2008_s27 }
 0x904   : > { %v1406_v25 = vpop.permute.xlu0 %1405 }
 0x905   : > { %1409 = vst.msk [vmem:[#allocation2] sm:$0x1] %vm1408_vm6, %v1406_v25 }
 0x90c   : > { %v1410_v26 = vld [vmem:[#allocation2] sm:$0x1] }
 0x90d   : > { %1923 = vmatmul.mubr.f32.vlgmr.msra.gmra.mxu0 %v1410_v26 }
 0x9cd   : > { %v1494_v31 = vpop.f32.mrf.mxu0 }
 0x9ce   : > { %v1495_v32 = vadd.f32 %v1494_v31, %v1427_v30 }
 0x9cf   : > { %v1924_v33 = vpop.f32.mrf.mxu0 }
 0x9d0   : > { %v1498_v34 = vmax.f32 %v1495_v32, 0.0 }
 0x9d2   : > { %1942 = vmatmul.mubr.msk.f32.vlgmr.msra.gmra.mxu1 %vm1508_vm7, %v1498_v34 }
 0xa92   : > { %v1578_v36 = vpop.f32.mrf.mxu1 }
 0xa93   : > { %v1579_v37 = vadd.f32 %v1578_v36, %v1507_v35 }
 0xa94   : > { %v1943_v2 = vpop.f32.mrf.mxu1 }
 0xa95   : > { %v1723_v38 = vmul.f32 -1.442695, %v1579_v37 }
 0xa97   : > { %1993 = vpow2.f32 %v1723_v38 }
 0xaa4   : > { %v1994_v39 = vpop.eup %1993 }
 0xaa5   : > { %v1585_v40 = vadd.f32 1.0, %v1994_v39 }
 0xaa7   : > { %1995 = vrcp.f32 %v1585_v40 }
 0xab4   : > { %v1996_v41 = vpop.eup %1995 }
 0xab5   : > { %1589 = vst.msk [vmem:[%s377_s11] sm:$0x1] %vm1588_vm8, %v1996_v41 }
 0xab6 PF: > { %s22_s15 = sadd.s32 1, %s2003_s15  }
 0xab7   : > { %p19_p4 = scmp.ge.s32.totalorder %s22_s15, 4  }
 0xab9   :  { %21 = sbr.rel (!%p19_p4) target bundleno = 3 (0x3), region = 99 }

</bundles_post_ra>
